<compile_context>
chip_gen: v6e
topology: v6e:2x2x1
jax: 0.10.0
libtpu: 0.0.40
codegen_flags: <defaults>
</compile_context>

<pallas_src>
import jax
import jax.numpy as jnp
import numpy as np
from jax.experimental import pallas as pl
from jax.experimental.pallas import tpu as pltpu
from jax.scipy.special import digamma, gammaln

EPS = 1e-8  # module-level EPS constant in dpn/criterions.py (standard choice)

_HALF_LOG_2PI = 0.9189385332046727  # 0.5 * log(2*pi)
_LANE = 128                         # TPU lane width (f32)


def _cdiv(a, b):
    return -(-a // b)


def _round_up(a, m):
    return _cdiv(a, m) * m


# ---------------------------------------------------------------------------
# Fused lgamma/digamma (in-kernel, EUP-light and VALU-light)
# ---------------------------------------------------------------------------
def _lgamma_digamma(x):
    """Fused (lgamma(x), digamma(x)) for x > 0.

    Shift-by-4 recurrence (for x < 4) + asymptotic series at z >= 4.  The 4
    shift terms are folded with VPU-only arithmetic:
        P        = prod_k (xs+k)            -> one log instead of 4
        N (N/P)  = sum_k 1/(xs+k)           -> one divide instead of 4
    log(z) and 1/z are shared by both functions, and the two divides (1/z and
    N/P) are folded into one 1/(z*P).  The recurrence runs unpredicated on
    xs = min(x, 4) (so P <= 4*5*6*7 = 840, no f32 overflow); a single select
    per correction zeroes it on the no-shift path.
    EUP ops/element: exp (caller), log(P), log(z), 1/(z*P).
    """
    need_shift = x < 4.0
    xs = jnp.minimum(x, 4.0)

    # P = xs(xs+1)(xs+2)(xs+3);  N/P = 1/xs + 1/(xs+1) + 1/(xs+2) + 1/(xs+3)
    P = xs
    N = jnp.ones_like(x)
    for k in (1.0, 2.0, 3.0):
        t = xs + k
        N = N * t + P
        P = P * t

    z = jnp.where(need_shift, x + 4.0, x)          # z >= 4 everywhere
    log_z = jnp.log(z)
    log_p = jnp.where(need_shift, jnp.log(P), 0.0)

    inv_zp = 1.0 / (z * P)                         # single EUP divide, shared
    zinv = inv_zp * P                              # == 1/z
    recip_sum = jnp.where(need_shift, N * (inv_zp * z), 0.0)   # == N/P
    zinv2 = zinv * zinv

    lg_series = zinv * (1.0 / 12.0 + zinv2 * (-1.0 / 360.0
                 + zinv2 * (1.0 / 1260.0 + zinv2 * (-1.0 / 1680.0))))
    dg_series = zinv2 * (1.0 / 12.0 - zinv2 * (1.0 / 120.0
                 - zinv2 * (1.0 / 252.0 - zinv2 * (1.0 / 240.0))))

    lgamma_x = (z - 0.5) * log_z - z + _HALF_LOG_2PI + lg_series - log_p
    digamma_x = log_z - 0.5 * zinv - dg_series - recip_sum
    return lgamma_x, digamma_x


# ---------------------------------------------------------------------------
# Kernels: per-tile class reductions, lane-packed (samples on the 128-lane axis)
# ---------------------------------------------------------------------------
def _de_tile(x_cb, conc_ref, slg_ref, sadg_ref):
    """x_cb: (C, TB) f32 -- classes on sublanes, samples on lanes."""
    alphas = jnp.exp(x_cb) + EPS                                 # (C, TB)
    lg_a, dg_a = _lgamma_digamma(alphas)                         # lane-dense
    conc_ref[...] = jnp.sum(alphas, axis=0, keepdims=True)       # (1, TB)
    slg_ref[...] = jnp.sum(lg_a, axis=0, keepdims=True)          # (1, TB)
    sadg_ref[...] = jnp.sum((alphas - 1.0) * dg_a, axis=0, keepdims=True)


def _de_kernel_rowmajor(logits_ref, conc_ref, slg_ref, sadg_ref):
    # (TB, C) block straight from the (B, C) logits (contiguous DMA); relayout
    # to (C, TB) on the otherwise-idle XLU so all heavy work is lane-dense.
    _de_tile(logits_ref[...].T, conc_ref, slg_ref, sadg_ref)


def _de_kernel_colmajor(logits_ref, conc_ref, slg_ref, sadg_ref):
    # (C, TB) block of a wrapper-transposed (C, B) array (fallback path only).
    _de_tile(logits_ref[...], conc_ref, slg_ref, sadg_ref)


def _pallas_row_sums(logits, tb, *, in_kernel_transpose):
    """Returns (conc, sum_lgamma, sum_alpha_digamma), each of shape (1, B)."""
    B, C = logits.shape
    grid = (_cdiv(B, tb),)
    out_shape = tuple(jax.ShapeDtypeStruct((1, B), jnp.float32) for _ in range(3))
    out_specs = [pl.BlockSpec((1, tb), lambda i: (0, i)) for _ in range(3)]
    params = pltpu.CompilerParams(
        dimension_semantics=("parallel",),     # v7x: shard batch tiles over both TCs
        vmem_limit_bytes=32 * 1024 * 1024,     # v5e scoped default is only 16 MiB
    )
    if in_kernel_transpose:
        kernel = _de_kernel_rowmajor
        x = logits
        in_spec = pl.BlockSpec((tb, C), lambda i: (i, 0))
    else:
        # Extra HBM read+write pass; only used if the in-kernel (TB, C)->(C, TB)
        # relayout is unsupported by the local Mosaic lowering.
        kernel = _de_kernel_colmajor
        x = jnp.transpose(logits)
        in_spec = pl.BlockSpec((C, tb), lambda i: (0, i))
    return pl.pallas_call(
        kernel,
        out_shape=out_shape,
        grid=grid,
        in_specs=[in_spec],
        out_specs=out_specs,
        compiler_params=params,
    )(x)


_INKERNEL_TRANSPOSE_OK = {}


def _in_kernel_transpose_ok(C):
    """One-time feature/correctness probe for the in-kernel (TB, C) -> (C, TB)
    relayout; falls back to the previously-validated wrapper transpose if the
    local Mosaic lowering rejects (or mishandles) the padded transpose."""
    ok = _INKERNEL_TRANSPOSE_OK.get(C)
    if ok is None:
        try:
            x = jnp.sin(jnp.arange(_LANE * C, dtype=jnp.float32)).reshape(_LANE, C)
            conc, _, _ = _pallas_row_sums(x, _LANE, in_kernel_transpose=True)
            expected = jnp.sum(jnp.exp(x) + EPS, axis=1)
            ok = bool(jnp.allclose(conc[0], expected, rtol=1e-4, atol=1e-4))
        except Exception:
            ok = False
        _INKERNEL_TRANSPOSE_OK[C] = ok
    return ok


def _pick_batch_tile(B, C, *, target_lanes=16384, block_budget_bytes=8 << 20):
    """Sample (lane) tile: multiple of 128, sized from B so ragged-tile waste is
    small, >= 2 grid steps when possible (both v7x TensorCores), and capped so
    the double-buffered (tb, C) f32 input block stays a few MiB even on v7x."""
    if B <= _LANE:
        return _LANE
    steps = max(2, _cdiv(B, target_lanes))
    tb = _round_up(_cdiv(B, steps), _LANE)
    cap = max(_LANE, (block_budget_bytes // (2 * 4 * max(C, 1)) // _LANE) * _LANE)
    return max(_LANE, min(tb, cap))


def differential_entropy_loss(logits):
    """Scalar loss: batch mean of the Dirichlet differential entropy."""
    B, C = logits.shape
    tb = _pick_batch_tile(B, C)
    conc, sum_lg, sum_adg = _pallas_row_sums(
        logits, tb, in_kernel_transpose=_in_kernel_transpose_ok(C))
    conc = conc[0]
    # O(B) epilogue: doing gammaln/digamma(conc) here (on B values) instead of
    # on a 1/8-sublane-dense row inside the kernel removes ~1/3 of the kernel's
    # VALU work at C=16, per the perf review.
    de = (sum_lg[0] - gammaln(conc)
          + (conc - float(C)) * digamma(conc)
          - sum_adg[0])
    # Equals the PyTorch (B, B)-broadcast mean (see exactness note above).
    return jnp.mean(de)


def _reference_loss(logits):
    """Literal JAX transcription of the PyTorch forward (incl. broadcast)."""
    num_classes = logits.shape[1]
    alphas = jnp.exp(logits) + EPS
    conc = jnp.sum(alphas, axis=1, keepdims=True)                    # (B, 1)
    de = (jnp.sum(gammaln(alphas), axis=1)                           # (B,)
          - gammaln(conc)                                            # -> (B, B)
          + (conc - num_classes) * digamma(conc)
          - jnp.sum((alphas - 1.0) * digamma(alphas), axis=1))
    return jnp.mean(de)


if __name__ == "__main__":
    key = jax.random.PRNGKey(0)
    k_small, k_big = jax.random.split(key)

    # Small shape implied by the module: logits of shape (batch, num_classes).
    batch, num_classes = 8, 16
    logits = jax.random.normal(k_small, (batch, num_classes), dtype=jnp.float32)
    loss = jax.block_until_ready(differential_entropy_loss(logits))
    ref = jax.block_until_ready(_reference_loss(logits))
    np.testing.assert_allclose(np.asarray(loss), np.asarray(ref),
                               rtol=1e-4, atol=1e-4)

    # Larger, non-multiple-of-tile batch with a wider logit range: exercises the
    # multi-step grid, ragged last tile and the shift-by-4 approximation.
    big_b = 4109
    logits_big = 2.0 * jax.random.normal(k_big, (big_b, num_classes),
                                         dtype=jnp.float32)
    loss_big = jax.block_until_ready(differential_entropy_loss(logits_big))
    ref_big = jax.block_until_ready(_reference_loss(logits_big))
    np.testing.assert_allclose(np.asarray(loss_big), np.asarray(ref_big),
                               rtol=1e-2, atol=1e-2)

    print("KERNEL_OK")
</pallas_src>

<mosaic_0001>
module attributes {stable_mosaic.version = 11 : i64} {
  func.func @_de_kernel_rowmajor(%arg0: i32, %arg1: memref<128x16xf32, #tpu.memory_space<vmem>>, %arg2: memref<1x128xf32, #tpu.memory_space<vmem>>, %arg3: memref<1x128xf32, #tpu.memory_space<vmem>>, %arg4: memref<1x128xf32, #tpu.memory_space<vmem>>) attributes {dimension_semantics = [#tpu.dimension_semantics<parallel>], iteration_bounds = array<i64: 1>, scalar_prefetch = 0 : i64, scratch_operands = 0 : i64, tpu.core_type = #tpu.core_type<tc>, window_params = [{transform_indices = @transform_0, window_bounds = array<i64: 128, 16>}, {transform_indices = @transform_1, window_bounds = array<i64: 1, 128>}, {transform_indices = @transform_2, window_bounds = array<i64: 1, 128>}, {transform_indices = @transform_3, window_bounds = array<i64: 1, 128>}]} {
    %c0 = arith.constant 0 : index
    %c0_0 = arith.constant 0 : index
    %0 = vector.load %arg1[%c0, %c0_0] : memref<128x16xf32, #tpu.memory_space<vmem>>, vector<128x16xf32>
    %1 = tpu.transpose %0, [1, 0] : vector<128x16xf32> -> vector<16x128xf32>
    %2 = math.exp %1 : vector<16x128xf32>
    %cst = arith.constant 9.99999993E-9 : f32
    %3 = vector.broadcast %cst : f32 to vector<16x128xf32>
    %4 = arith.addf %2, %3 : vector<16x128xf32>
    %cst_1 = arith.constant 4.000000e+00 : f32
    %5 = vector.broadcast %cst_1 : f32 to vector<16x128xf32>
    %6 = arith.cmpf olt, %4, %5 : vector<16x128xf32>
    %cst_2 = arith.constant 4.000000e+00 : f32
    %7 = vector.broadcast %cst_2 : f32 to vector<16x128xf32>
    %8 = arith.minimumf %4, %7 : vector<16x128xf32>
    %cst_3 = arith.constant 1.000000e+00 : f32
    %9 = vector.broadcast %cst_3 : f32 to vector<16x128xf32>
    %cst_4 = arith.constant 1.000000e+00 : f32
    %10 = vector.broadcast %cst_4 : f32 to vector<16x128xf32>
    %11 = arith.addf %8, %10 : vector<16x128xf32>
    %12 = arith.mulf %9, %11 : vector<16x128xf32>
    %13 = arith.addf %12, %8 : vector<16x128xf32>
    %14 = arith.mulf %8, %11 : vector<16x128xf32>
    %cst_5 = arith.constant 2.000000e+00 : f32
    %15 = vector.broadcast %cst_5 : f32 to vector<16x128xf32>
    %16 = arith.addf %8, %15 : vector<16x128xf32>
    %17 = arith.mulf %13, %16 : vector<16x128xf32>
    %18 = arith.addf %17, %14 : vector<16x128xf32>
    %19 = arith.mulf %14, %16 : vector<16x128xf32>
    %cst_6 = arith.constant 3.000000e+00 : f32
    %20 = vector.broadcast %cst_6 : f32 to vector<16x128xf32>
    %21 = arith.addf %8, %20 : vector<16x128xf32>
    %22 = arith.mulf %18, %21 : vector<16x128xf32>
    %23 = arith.addf %22, %19 : vector<16x128xf32>
    %24 = arith.mulf %19, %21 : vector<16x128xf32>
    %cst_7 = arith.constant 4.000000e+00 : f32
    %25 = vector.broadcast %cst_7 : f32 to vector<16x128xf32>
    %26 = arith.addf %4, %25 : vector<16x128xf32>
    %27 = arith.select %6, %26, %4 : vector<16x128xi1>, vector<16x128xf32>
    %28 = math.log %27 : vector<16x128xf32>
    %29 = math.log %24 : vector<16x128xf32>
    %cst_8 = arith.constant 0.000000e+00 : f32
    %30 = vector.broadcast %cst_8 : f32 to vector<16x128xf32>
    %31 = arith.select %6, %29, %30 : vector<16x128xi1>, vector<16x128xf32>
    %32 = arith.mulf %27, %24 : vector<16x128xf32>
    %cst_9 = arith.constant 1.000000e+00 : f32
    %33 = vector.broadcast %cst_9 : f32 to vector<16x128xf32>
    %34 = arith.divf %33, %32 : vector<16x128xf32>
    %35 = arith.mulf %34, %24 : vector<16x128xf32>
    %36 = arith.mulf %34, %27 : vector<16x128xf32>
    %37 = arith.mulf %23, %36 : vector<16x128xf32>
    %cst_10 = arith.constant 0.000000e+00 : f32
    %38 = vector.broadcast %cst_10 : f32 to vector<16x128xf32>
    %39 = arith.select %6, %37, %38 : vector<16x128xi1>, vector<16x128xf32>
    %40 = arith.mulf %35, %35 : vector<16x128xf32>
    %cst_11 = arith.constant -5.95238118E-4 : f32
    %41 = vector.broadcast %cst_11 : f32 to vector<16x128xf32>
    %42 = arith.mulf %40, %41 : vector<16x128xf32>
    %cst_12 = arith.constant 7.93650805E-4 : f32
    %43 = vector.broadcast %cst_12 : f32 to vector<16x128xf32>
    %44 = arith.addf %43, %42 : vector<16x128xf32>
    %45 = arith.mulf %40, %44 : vector<16x128xf32>
    %cst_13 = arith.constant -0.00277777785 : f32
    %46 = vector.broadcast %cst_13 : f32 to vector<16x128xf32>
    %47 = arith.addf %46, %45 : vector<16x128xf32>
    %48 = arith.mulf %40, %47 : vector<16x128xf32>
    %cst_14 = arith.constant 0.0833333358 : f32
    %49 = vector.broadcast %cst_14 : f32 to vector<16x128xf32>
    %50 = arith.addf %49, %48 : vector<16x128xf32>
    %51 = arith.mulf %35, %50 : vector<16x128xf32>
    %cst_15 = arith.constant 0.00416666688 : f32
    %52 = vector.broadcast %cst_15 : f32 to vector<16x128xf32>
    %53 = arith.mulf %40, %52 : vector<16x128xf32>
    %cst_16 = arith.constant 0.0039682542 : f32
    %54 = vector.broadcast %cst_16 : f32 to vector<16x128xf32>
    %55 = arith.subf %54, %53 : vector<16x128xf32>
    %56 = arith.mulf %40, %55 : vector<16x128xf32>
    %cst_17 = arith.constant 0.00833333377 : f32
    %57 = vector.broadcast %cst_17 : f32 to vector<16x128xf32>
    %58 = arith.subf %57, %56 : vector<16x128xf32>
    %59 = arith.mulf %40, %58 : vector<16x128xf32>
    %cst_18 = arith.constant 0.0833333358 : f32
    %60 = vector.broadcast %cst_18 : f32 to vector<16x128xf32>
    %61 = arith.subf %60, %59 : vector<16x128xf32>
    %62 = arith.mulf %40, %61 : vector<16x128xf32>
    %cst_19 = arith.constant 5.000000e-01 : f32
    %63 = vector.broadcast %cst_19 : f32 to vector<16x128xf32>
    %64 = arith.subf %27, %63 : vector<16x128xf32>
    %65 = arith.mulf %64, %28 : vector<16x128xf32>
    %66 = arith.subf %65, %27 : vector<16x128xf32>
    %cst_20 = arith.constant 0.918938517 : f32
    %67 = vector.broadcast %cst_20 : f32 to vector<16x128xf32>
    %68 = arith.addf %66, %67 : vector<16x128xf32>
    %69 = arith.addf %68, %51 : vector<16x128xf32>
    %70 = arith.subf %69, %31 : vector<16x128xf32>
    %cst_21 = arith.constant 5.000000e-01 : f32
    %71 = vector.broadcast %cst_21 : f32 to vector<16x128xf32>
    %72 = arith.mulf %71, %35 : vector<16x128xf32>
    %73 = arith.subf %28, %72 : vector<16x128xf32>
    %74 = arith.subf %73, %62 : vector<16x128xf32>
    %75 = arith.subf %74, %39 : vector<16x128xf32>
    %cst_22 = arith.constant dense<0.000000e+00> : vector<128xf32>
    %76 = vector.multi_reduction <add>, %4, %cst_22 [0] : vector<16x128xf32> to vector<128xf32>
    %77 = vector.shape_cast %76 : vector<128xf32> to vector<1x128xf32>
    %c0_23 = arith.constant 0 : index
    %c0_24 = arith.constant 0 : index
    %78 = vector.load %arg2[%c0_23, %c0_24] : memref<1x128xf32, #tpu.memory_space<vmem>>, vector<1x128xf32>
    tpu.vector_store %arg2[%c0_23, %c0_24], %77 {strides = array<i32>} : memref<1x128xf32, #tpu.memory_space<vmem>>, vector<1x128xf32>,
    %cst_25 = arith.constant dense<0.000000e+00> : vector<128xf32>
    %79 = vector.multi_reduction <add>, %70, %cst_25 [0] : vector<16x128xf32> to vector<128xf32>
    %80 = vector.shape_cast %79 : vector<128xf32> to vector<1x128xf32>
    %c0_26 = arith.constant 0 : index
    %c0_27 = arith.constant 0 : index
    %81 = vector.load %arg3[%c0_26, %c0_27] : memref<1x128xf32, #tpu.memory_space<vmem>>, vector<1x128xf32>
    tpu.vector_store %arg3[%c0_26, %c0_27], %80 {strides = array<i32>} : memref<1x128xf32, #tpu.memory_space<vmem>>, vector<1x128xf32>,
    %cst_28 = arith.constant 1.000000e+00 : f32
    %82 = vector.broadcast %cst_28 : f32 to vector<16x128xf32>
    %83 = arith.subf %4, %82 : vector<16x128xf32>
    %84 = arith.mulf %83, %75 : vector<16x128xf32>
    %cst_29 = arith.constant dense<0.000000e+00> : vector<128xf32>
    %85 = vector.multi_reduction <add>, %84, %cst_29 [0] : vector<16x128xf32> to vector<128xf32>
    %86 = vector.shape_cast %85 : vector<128xf32> to vector<1x128xf32>
    %c0_30 = arith.constant 0 : index
    %c0_31 = arith.constant 0 : index
    %87 = vector.load %arg4[%c0_30, %c0_31] : memref<1x128xf32, #tpu.memory_space<vmem>>, vector<1x128xf32>
    tpu.vector_store %arg4[%c0_30, %c0_31], %86 {strides = array<i32>} : memref<1x128xf32, #tpu.memory_space<vmem>>, vector<1x128xf32>,
    return
  }
  func.func @transform_0(%arg0: i32) -> (i32, i32) {
    %c0_i32 = arith.constant 0 : i32
    %c0_i32_0 = arith.constant 0 : i32
    return %arg0, %c0_i32 : i32, i32
  }
  func.func @transform_1(%arg0: i32) -> (i32, i32) {
    %c0_i32 = arith.constant 0 : i32
    %c0_i32_0 = arith.constant 0 : i32
    return %c0_i32, %arg0 : i32, i32
  }
  func.func @transform_2(%arg0: i32) -> (i32, i32) {
    %c0_i32 = arith.constant 0 : i32
    %c0_i32_0 = arith.constant 0 : i32
    return %c0_i32, %arg0 : i32, i32
  }
  func.func @transform_3(%arg0: i32) -> (i32, i32) {
    %c0_i32 = arith.constant 0 : i32
    %c0_i32_0 = arith.constant 0 : i32
    return %c0_i32, %arg0 : i32, i32
  }
}

module attributes {stable_mosaic.version = 11 : i64} {
  func.func @_de_kernel_colmajor(%arg0: i32, %arg1: memref<16x128xf32, #tpu.memory_space<vmem>>, %arg2: memref<1x128xf32, #tpu.memory_space<vmem>>, %arg3: memref<1x128xf32, #tpu.memory_space<vmem>>, %arg4: memref<1x128xf32, #tpu.memory_space<vmem>>) attributes {dimension_semantics = [#tpu.dimension_semantics<parallel>], iteration_bounds = array<i64: 1>, scalar_prefetch = 0 : i64, scratch_operands = 0 : i64, tpu.core_type = #tpu.core_type<tc>, window_params = [{transform_indices = @transform_0, window_bounds = array<i64: 16, 128>}, {transform_indices = @transform_1, window_bounds = array<i64: 1, 128>}, {transform_indices = @transform_2, window_bounds = array<i64: 1, 128>}, {transform_indices = @transform_3, window_bounds = array<i64: 1, 128>}]} {
    %c0 = arith.constant 0 : index
    %c0_0 = arith.constant 0 : index
    %0 = vector.load %arg1[%c0, %c0_0] : memref<16x128xf32, #tpu.memory_space<vmem>>, vector<16x128xf32>
    %1 = math.exp %0 : vector<16x128xf32>
    %cst = arith.constant 9.99999993E-9 : f32
    %2 = vector.broadcast %cst : f32 to vector<16x128xf32>
    %3 = arith.addf %1, %2 : vector<16x128xf32>
    %cst_1 = arith.constant 4.000000e+00 : f32
    %4 = vector.broadcast %cst_1 : f32 to vector<16x128xf32>
    %5 = arith.cmpf olt, %3, %4 : vector<16x128xf32>
    %cst_2 = arith.constant 4.000000e+00 : f32
    %6 = vector.broadcast %cst_2 : f32 to vector<16x128xf32>
    %7 = arith.minimumf %3, %6 : vector<16x128xf32>
    %cst_3 = arith.constant 1.000000e+00 : f32
    %8 = vector.broadcast %cst_3 : f32 to vector<16x128xf32>
    %cst_4 = arith.constant 1.000000e+00 : f32
    %9 = vector.broadcast %cst_4 : f32 to vector<16x128xf32>
    %10 = arith.addf %7, %9 : vector<16x128xf32>
    %11 = arith.mulf %8, %10 : vector<16x128xf32>
    %12 = arith.addf %11, %7 : vector<16x128xf32>
    %13 = arith.mulf %7, %10 : vector<16x128xf32>
    %cst_5 = arith.constant 2.000000e+00 : f32
    %14 = vector.broadcast %cst_5 : f32 to vector<16x128xf32>
    %15 = arith.addf %7, %14 : vector<16x128xf32>
    %16 = arith.mulf %12, %15 : vector<16x128xf32>
    %17 = arith.addf %16, %13 : vector<16x128xf32>
    %18 = arith.mulf %13, %15 : vector<16x128xf32>
    %cst_6 = arith.constant 3.000000e+00 : f32
    %19 = vector.broadcast %cst_6 : f32 to vector<16x128xf32>
    %20 = arith.addf %7, %19 : vector<16x128xf32>
    %21 = arith.mulf %17, %20 : vector<16x128xf32>
    %22 = arith.addf %21, %18 : vector<16x128xf32>
    %23 = arith.mulf %18, %20 : vector<16x128xf32>
    %cst_7 = arith.constant 4.000000e+00 : f32
    %24 = vector.broadcast %cst_7 : f32 to vector<16x128xf32>
    %25 = arith.addf %3, %24 : vector<16x128xf32>
    %26 = arith.select %5, %25, %3 : vector<16x128xi1>, vector<16x128xf32>
    %27 = math.log %26 : vector<16x128xf32>
    %28 = math.log %23 : vector<16x128xf32>
    %cst_8 = arith.constant 0.000000e+00 : f32
    %29 = vector.broadcast %cst_8 : f32 to vector<16x128xf32>
    %30 = arith.select %5, %28, %29 : vector<16x128xi1>, vector<16x128xf32>
    %31 = arith.mulf %26, %23 : vector<16x128xf32>
    %cst_9 = arith.constant 1.000000e+00 : f32
    %32 = vector.broadcast %cst_9 : f32 to vector<16x128xf32>
    %33 = arith.divf %32, %31 : vector<16x128xf32>
    %34 = arith.mulf %33, %23 : vector<16x128xf32>
    %35 = arith.mulf %33, %26 : vector<16x128xf32>
    %36 = arith.mulf %22, %35 : vector<16x128xf32>
    %cst_10 = arith.constant 0.000000e+00 : f32
    %37 = vector.broadcast %cst_10 : f32 to vector<16x128xf32>
    %38 = arith.select %5, %36, %37 : vector<16x128xi1>, vector<16x128xf32>
    %39 = arith.mulf %34, %34 : vector<16x128xf32>
    %cst_11 = arith.constant -5.95238118E-4 : f32
    %40 = vector.broadcast %cst_11 : f32 to vector<16x128xf32>
    %41 = arith.mulf %39, %40 : vector<16x128xf32>
    %cst_12 = arith.constant 7.93650805E-4 : f32
    %42 = vector.broadcast %cst_12 : f32 to vector<16x128xf32>
    %43 = arith.addf %42, %41 : vector<16x128xf32>
    %44 = arith.mulf %39, %43 : vector<16x128xf32>
    %cst_13 = arith.constant -0.00277777785 : f32
    %45 = vector.broadcast %cst_13 : f32 to vector<16x128xf32>
    %46 = arith.addf %45, %44 : vector<16x128xf32>
    %47 = arith.mulf %39, %46 : vector<16x128xf32>
    %cst_14 = arith.constant 0.0833333358 : f32
    %48 = vector.broadcast %cst_14 : f32 to vector<16x128xf32>
    %49 = arith.addf %48, %47 : vector<16x128xf32>
    %50 = arith.mulf %34, %49 : vector<16x128xf32>
    %cst_15 = arith.constant 0.00416666688 : f32
    %51 = vector.broadcast %cst_15 : f32 to vector<16x128xf32>
    %52 = arith.mulf %39, %51 : vector<16x128xf32>
    %cst_16 = arith.constant 0.0039682542 : f32
    %53 = vector.broadcast %cst_16 : f32 to vector<16x128xf32>
    %54 = arith.subf %53, %52 : vector<16x128xf32>
    %55 = arith.mulf %39, %54 : vector<16x128xf32>
    %cst_17 = arith.constant 0.00833333377 : f32
    %56 = vector.broadcast %cst_17 : f32 to vector<16x128xf32>
    %57 = arith.subf %56, %55 : vector<16x128xf32>
    %58 = arith.mulf %39, %57 : vector<16x128xf32>
    %cst_18 = arith.constant 0.0833333358 : f32
    %59 = vector.broadcast %cst_18 : f32 to vector<16x128xf32>
    %60 = arith.subf %59, %58 : vector<16x128xf32>
    %61 = arith.mulf %39, %60 : vector<16x128xf32>
    %cst_19 = arith.constant 5.000000e-01 : f32
    %62 = vector.broadcast %cst_19 : f32 to vector<16x128xf32>
    %63 = arith.subf %26, %62 : vector<16x128xf32>
    %64 = arith.mulf %63, %27 : vector<16x128xf32>
    %65 = arith.subf %64, %26 : vector<16x128xf32>
    %cst_20 = arith.constant 0.918938517 : f32
    %66 = vector.broadcast %cst_20 : f32 to vector<16x128xf32>
    %67 = arith.addf %65, %66 : vector<16x128xf32>
    %68 = arith.addf %67, %50 : vector<16x128xf32>
    %69 = arith.subf %68, %30 : vector<16x128xf32>
    %cst_21 = arith.constant 5.000000e-01 : f32
    %70 = vector.broadcast %cst_21 : f32 to vector<16x128xf32>
    %71 = arith.mulf %70, %34 : vector<16x128xf32>
    %72 = arith.subf %27, %71 : vector<16x128xf32>
    %73 = arith.subf %72, %61 : vector<16x128xf32>
    %74 = arith.subf %73, %38 : vector<16x128xf32>
    %cst_22 = arith.constant dense<0.000000e+00> : vector<128xf32>
    %75 = vector.multi_reduction <add>, %3, %cst_22 [0] : vector<16x128xf32> to vector<128xf32>
    %76 = vector.shape_cast %75 : vector<128xf32> to vector<1x128xf32>
    %c0_23 = arith.constant 0 : index
    %c0_24 = arith.constant 0 : index
    %77 = vector.load %arg2[%c0_23, %c0_24] : memref<1x128xf32, #tpu.memory_space<vmem>>, vector<1x128xf32>
    tpu.vector_store %arg2[%c0_23, %c0_24], %76 {strides = array<i32>} : memref<1x128xf32, #tpu.memory_space<vmem>>, vector<1x128xf32>,
    %cst_25 = arith.constant dense<0.000000e+00> : vector<128xf32>
    %78 = vector.multi_reduction <add>, %69, %cst_25 [0] : vector<16x128xf32> to vector<128xf32>
    %79 = vector.shape_cast %78 : vector<128xf32> to vector<1x128xf32>
    %c0_26 = arith.constant 0 : index
    %c0_27 = arith.constant 0 : index
    %80 = vector.load %arg3[%c0_26, %c0_27] : memref<1x128xf32, #tpu.memory_space<vmem>>, vector<1x128xf32>
    tpu.vector_store %arg3[%c0_26, %c0_27], %79 {strides = array<i32>} : memref<1x128xf32, #tpu.memory_space<vmem>>, vector<1x128xf32>,
    %cst_28 = arith.constant 1.000000e+00 : f32
    %81 = vector.broadcast %cst_28 : f32 to vector<16x128xf32>
    %82 = arith.subf %3, %81 : vector<16x128xf32>
    %83 = arith.mulf %82, %74 : vector<16x128xf32>
    %cst_29 = arith.constant dense<0.000000e+00> : vector<128xf32>
    %84 = vector.multi_reduction <add>, %83, %cst_29 [0] : vector<16x128xf32> to vector<128xf32>
    %85 = vector.shape_cast %84 : vector<128xf32> to vector<1x128xf32>
    %c0_30 = arith.constant 0 : index
    %c0_31 = arith.constant 0 : index
    %86 = vector.load %arg4[%c0_30, %c0_31] : memref<1x128xf32, #tpu.memory_space<vmem>>, vector<1x128xf32>
    tpu.vector_store %arg4[%c0_30, %c0_31], %85 {strides = array<i32>} : memref<1x128xf32, #tpu.memory_space<vmem>>, vector<1x128xf32>,
    return
  }
  func.func @transform_0(%arg0: i32) -> (i32, i32) {
    %c0_i32 = arith.constant 0 : i32
    %c0_i32_0 = arith.constant 0 : i32
    return %c0_i32, %arg0 : i32, i32
  }
  func.func @transform_1(%arg0: i32) -> (i32, i32) {
    %c0_i32 = arith.constant 0 : i32
    %c0_i32_0 = arith.constant 0 : i32
    return %c0_i32, %arg0 : i32, i32
  }
  func.func @transform_2(%arg0: i32) -> (i32, i32) {
    %c0_i32 = arith.constant 0 : i32
    %c0_i32_0 = arith.constant 0 : i32
    return %c0_i32, %arg0 : i32, i32
  }
  func.func @transform_3(%arg0: i32) -> (i32, i32) {
    %c0_i32 = arith.constant 0 : i32
    %c0_i32_0 = arith.constant 0 : i32
    return %c0_i32, %arg0 : i32, i32
  }
}

</mosaic_0001>

<bundles_post_ra>
// kernel: tpu_custom_call.1
= control target key start
LH: loop header
LB: loop body
LE: loop exit
PB: predicated region body
PF: predicated region fallthrough
CT: control target
= control target key end

     0   :  { %9 = vsyncpa [#allocation3], 0  ;;  %s461_s0 = inlined_call_operand.vmem [shape: f32[128,16], index: 0, kind: input, shape index: {}]   ;;  %s462_s1 = inlined_call_operand.hbm [shape: f32[1,128], index: 1, kind: output, shape index: {0}]   ;;  %s463_s2 = inlined_call_operand.hbm [shape: f32[1,128], index: 2, kind: output, shape index: {1}]   ;;  %s464_s3 = inlined_call_operand.hbm [shape: f32[1,128], index: 3, kind: output, shape index: {2}]  }
   0x1   :  { %v13_v0 = vld [vmem:[%s461_s0] sm:$0xff]  ;;  %v14_v1 = vld [vmem:[%s461_s0 + $0x8] sm:$0xff] }
   0x2   :  { %29 = vxpose.xlu0.b32.start [1/16] (narrow) %v13_v0, 16 }
   0x6   :  { %30 = vxpose.xlu0.b32.cont [2/16] (narrow) %v14_v1, 16 }
   0x7   :  { %10 = vsyncpa [#allocation5], 0  ;;  %v15_v2 = vld [vmem:[%s461_s0 + $0x10] sm:$0xff]  ;;  %v16_v3 = vld [vmem:[%s461_s0 + $0x18] sm:$0xff] }
   0x8   :  { %v17_v4 = vld [vmem:[%s461_s0 + $0x20] sm:$0xff]  ;;  %v18_v5 = vld [vmem:[%s461_s0 + $0x28] sm:$0xff]  ;;  %v19_v6 = vld [vmem:[%s461_s0 + $0x30] sm:$0xff] }
   0x9   :  { %v20_v7 = vld [vmem:[%s461_s0 + $0x38] sm:$0xff]  ;;  %v21_v8 = vld [vmem:[%s461_s0 + $0x40] sm:$0xff]  ;;  %v22_v9 = vld [vmem:[%s461_s0 + $0x48] sm:$0xff] }
   0xa   :  { %31 = vxpose.xlu0.b32.cont [3/16] (narrow) %v15_v2, 16  ;;  %v23_v10 = vld [vmem:[%s461_s0 + $0x50] sm:$0xff]  ;;  %v24_v11 = vld [vmem:[%s461_s0 + $0x58] sm:$0xff]  ;;  %v25_v12 = vld [vmem:[%s461_s0 + $0x60] sm:$0xff] }
   0xb   :  { %v26_v13 = vld [vmem:[%s461_s0 + $0x68] sm:$0xff]  ;;  %v27_v14 = vld [vmem:[%s461_s0 + $0x70] sm:$0xff]  ;;  %v28_v15 = vld [vmem:[%s461_s0 + $0x78] sm:$0xff]  ;;  %s327_s0 = smov [#allocation2]  }
   0xc   :  { %s205_s17 = sshll.u32 %s327_s0, 4  ;;  %s206_s17 = int_to_ptr.vmem [resolvable:$true] %s205_s17 }
   0xd   :  { %s263_s18 = scalar_lea.vmem %s206_s17, 16  ;;  %s267_s19 = scalar_lea.vmem %s206_s17, 32 }
   0xe   :  { %32 = vxpose.xlu0.b32.cont [4/16] (narrow) %v16_v3, 16  ;;  %p264_p0 = scmp.ne.s32.totalorder %s206_s17, %s263_s18  ;;  %p268_p1 = scmp.lt.s32.totalorder %s206_s17, %s206_s17 }
   0xf   :  { %p269_p2 = scmp.lt.s32.totalorder %s267_s19, %s263_s18 }
  0x11   :  { %p270_p3 = por %p269_p2, %p268_p1 }
  0x12   :  { %33 = vxpose.xlu0.b32.cont [5/16] (narrow) %v17_v4, 16 }
  0x13   :  { %p271_p4 = pnand %p270_p3, %p264_p0 }
  0x16   :  { %34 = vxpose.xlu0.b32.cont [6/16] (narrow) %v18_v5, 16 }
  0x1a   :  { %35 = vxpose.xlu0.b32.cont [7/16] (narrow) %v19_v6, 16 }
  0x1e   :  { %36 = vxpose.xlu0.b32.cont [8/16] (narrow) %v20_v7, 16 }
  0x22   :  { %37 = vxpose.xlu0.b32.cont [9/16] (narrow) %v21_v8, 16 }
  0x26   :  { %38 = vxpose.xlu0.b32.cont [10/16] (narrow) %v22_v9, 16 }
  0x2a   :  { %39 = vxpose.xlu0.b32.cont [11/16] (narrow) %v23_v10, 16 }
  0x2e   :  { %40 = vxpose.xlu0.b32.cont [12/16] (narrow) %v24_v11, 16 }
  0x32   :  { %41 = vxpose.xlu0.b32.cont [13/16] (narrow) %v25_v12, 16 }
  0x36   :  { %42 = vxpose.xlu0.b32.cont [14/16] (narrow) %v26_v13, 16 }
  0x3a   :  { %43 = vxpose.xlu0.b32.cont [15/16] (narrow) %v27_v14, 16 }
  0x3e   :  { %44 = vxpose.xlu0.b32.end [16/16] (narrow) %v28_v15, 16 }
  0x7e   :  { %v45_v16 = vpop.trf.xlu0 }
  0x7f   :  { %v61_v17 = vmul.f32 1.442695, %v45_v16 }
  0x81   :  { %247 = vpow2.f32 %v61_v17 }
  0x82   :  { %v46_v18 = vpop.trf.xlu0 }
  0x83   :  { %v63_v19 = vmul.f32 1.442695, %v46_v18 }
  0x85   :  { %249 = vpow2.f32 %v63_v19 }
  0x8e   :  { %v248_v20 = vpop.eup %247 }
  0x8f   :  { %v398_v21 = vadd.f32 1e-08, %v248_v20 }
  0x91   :  { %v69_v22 = vmin.f32 %v398_v21, 4.0  ;;  %v93_v29 = vadd.f32 4.0, %v398_v21  ;;  %vm67_vm0 = vcmp.lt.f32.partialorder %v398_v21, 4.0 }
  0x92   :  { %v250_v23 = vpop.eup %249 }
  0x93   :  { %v401_v24 = vadd.f32 1e-08, %v250_v23  ;;  %v71_v25 = vadd.f32 1.0, %v69_v22  ;;  %v77_v28 = vadd.f32 2.0, %v69_v22  ;;  %v410_v33 = vadd.f32 3.0, %v69_v22 }
  0x94   :  { %v418_v39 = vsel %vm67_vm0, %v93_v29, %v398_v21 }
  0x95   :  { %v70_v26 = vmin.f32 %v401_v24, 4.0  ;;  %v75_v27 = vmul.f32 %v71_v25, %v69_v22  ;;  %v171_v30 = vadd.f32 %v401_v24, %v398_v21  ;;  %v94_v38 = vadd.f32 4.0, %v401_v24 }
  0x96   :  { %vm68_vm1 = vcmp.lt.f32.partialorder %v401_v24, 4.0 }
  0x97   :  { %v72_v31 = vadd.f32 1.0, %v70_v26  ;;  %v408_v32 = vmul.f32 %v77_v28, %v75_v27  ;;  %v172_v34 = vrot.slane %v171_v30, 4  ;;  %v78_v36 = vadd.f32 2.0, %v70_v26 }
  0x98   :  { %v86_v42 = vadd.f32 3.0, %v70_v26  ;;  %v428_v46 = vsel %vm68_vm1, %v94_v38, %v401_v24 }
  0x99   :  { %v76_v35 = vmul.f32 %v72_v31, %v70_v26  ;;  %v91_v37 = vmul.f32 %v410_v33, %v408_v32  ;;  %v173_v40 = vadd.f32 %v172_v34, %v171_v30 }
  0x9b   :  { %v421_v41 = vmul.f32 %v78_v36, %v76_v35  ;;  %v107_v43 = vmul.f32 %v418_v39, %v91_v37  ;;  %v174_v44 = vrot.slane %v173_v40, 2 }
  0x9d   :  { %v92_v45 = vmul.f32 %v86_v42, %v421_v41  ;;  %251 = vrcp.f32 %v107_v43  ;;  %v175_v47 = vadd.f32 %v174_v44, %v173_v40 }
  0x9e   :  { %253 = vlog2.f32 %v418_v39 }
  0x9f   :  { %v108_v48 = vmul.f32 %v428_v46, %v92_v45  ;;  %v176_v49 = vrot.slane %v175_v47, 1 }
  0xa1   :  { %255 = vrcp.f32 %v108_v48  ;;  %v177_v50 = vadd.f32 %v176_v49, %v175_v47 }
  0xa2   :  { %257 = vlog2.f32 %v428_v46 }
  0xa3   :  { %178 = vst [vmem:[#allocation2] sm:$0x1] %v177_v50 }
  0xa4   :  { %274 = shalt.err (!%p271_p4)
}
  0xa5   :  { %208 = dma.vmem_to_hbm [thread:$0]  %s206_s17, 16, %s462_s1, [#allocation3]   ;;  %v73_v51 = vadd.f32 %v71_v25, %v69_v22  ;;  %v74_v53 = vadd.f32 %v72_v31, %v70_v26  ;;  %259 = vlog2.f32 %v91_v37  ;;  %v240_v9 = vadd.f32 -0.5, %v418_v39 }
  0xa6   :  { %261 = vlog2.f32 %v92_v45  ;;  %v241_v11 = vadd.f32 -0.5, %v428_v46  ;;  %s328_s1 = smov [#allocation4]   ;;  %s329_s23 = smov [#allocation6]  }
  0xa7   :  { %v79_v55 = vmul.f32 %v77_v28, %v73_v51  ;;  %v80_v59 = vmul.f32 %v78_v36, %v74_v53  ;;  %s215_s22 = sshll.u32 %s328_s1, 4  ;;  %s225_s24 = sshll.u32 %s329_s23, 4  ;;  %s216_s22 = int_to_ptr.vmem [resolvable:$true] %s215_s22  ;;  %s226_s24 = int_to_ptr.vmem [resolvable:$true] %s225_s24 }
  0xa8   :  { %s283_s25 = scalar_lea.vmem %s216_s22, 16  ;;  %s287_s26 = scalar_lea.vmem %s216_s22, 32 }
  0xa9   :  { %v81_v63 = vadd.f32 %v79_v55, %v75_v27  ;;  %v82_v5 = vadd.f32 %v80_v59, %v76_v35  ;;  %p284_p5 = scmp.ne.s32.totalorder %s216_s22, %s283_s25  ;;  %p288_p6 = scmp.lt.s32.totalorder %s216_s22, %s216_s22 }
  0xaa   :  { %v252_v52 = vpop.eup %251  ;;  %p289_p7 = scmp.lt.s32.totalorder %s287_s26, %s283_s25 }
  0xab   :  { %v113_v54 = vmul.f32 %v252_v52, %v91_v37  ;;  %v254_v56 = vpop.eup %253  ;;  %v87_v12 = vmul.f32 %v410_v33, %v81_v63  ;;  %v88_v19 = vmul.f32 %v86_v42, %v82_v5  ;;  %v115_v27 = vmul.f32 %v252_v52, %v418_v39 }
  0xac   :  { %v98_v1 = vmul.f32 0.6931472, %v254_v56  ;;  %p290_p8 = por %p289_p7, %p288_p6 }
  0xad   :  { %v121_v57 = vmul.f32 %v113_v54, %v113_v54  ;;  %v89_v26 = vadd.f32 %v87_v12, %v408_v32  ;;  %v163_v29 = vmul.f32 0.5, %v113_v54  ;;  %v90_v37 = vadd.f32 %v88_v19, %v421_v41 }
  0xae   :  { %v256_v58 = vpop.eup %255  ;;  %v153_v16 = vmul.f32 %v240_v9, %v98_v1  ;;  %p291_p9 = pnand %p290_p8, %p284_p5 }
  0xaf   :  { %v258_v60 = vpop.eup %257  ;;  %v114_v61 = vmul.f32 %v256_v58, %v92_v45  ;;  %v123_v62 = vmul.f32 -0.0005952381, %v121_v57  ;;  %v137_v0 = vmul.f32 0.004166667, %v121_v57  ;;  %v116_v38 = vmul.f32 %v256_v58, %v428_v46 }
  0xb0   :  { %v100_v4 = vmul.f32 0.6931472, %v258_v60  ;;  %v155_v34 = vsub.f32 %v153_v16, %v418_v39  ;;  %v117_v48 = vmul.f32 %v115_v27, %v89_v26  ;;  %v165_v50 = vsub.f32 %v98_v1, %v163_v29 }
  0xb1   :  { %v122_v2 = vmul.f32 %v114_v61, %v114_v61  ;;  %v125_v3 = vadd.f32 0.0007936508, %v123_v62  ;;  %v139_v6 = vsub.f32 0.003968254, %v137_v0  ;;  %v164_v45 = vmul.f32 0.5, %v114_v61 }
  0xb2   :  { %v154_v18 = vmul.f32 %v241_v11, %v100_v4  ;;  %v260_v30 = vpop.eup %259  ;;  %v157_v52 = vadd.f32 0.9189385, %v155_v34  ;;  %v118_v56 = vmul.f32 %v116_v38, %v90_v37 }
  0xb3   :  { %v124_v7 = vmul.f32 -0.0005952381, %v122_v2  ;;  %v127_v8 = vmul.f32 %v125_v3, %v121_v57  ;;  %v138_v10 = vmul.f32 0.004166667, %v122_v2  ;;  %v141_v13 = vmul.f32 %v139_v6, %v121_v57  ;;  %v262_v42 = vpop.eup %261 }
  0xb4   :  { %v156_v36 = vsub.f32 %v154_v18, %v428_v46  ;;  %v102_v47 = vmul.f32 0.6931472, %v260_v30  ;;  %v104_v53 = vmul.f32 0.6931472, %v262_v42  ;;  %v166_v58 = vsub.f32 %v100_v4, %v164_v45 }
  0xb5   :  { %v126_v14 = vadd.f32 0.0007936508, %v124_v7  ;;  %v129_v15 = vadd.f32 -0.0027777778, %v127_v8  ;;  %v140_v17 = vsub.f32 0.003968254, %v138_v10 }
  0xb6   :  { %v143_v20 = vsub.f32 0.008333334, %v141_v13  ;;  %v158_v55 = vadd.f32 0.9189385, %v156_v36  ;;  %v106_v1 = vsel %vm68_vm1, %v104_v53, 0.0  ;;  %v120_v3 = vsel %vm68_vm1, %v118_v56, 0.0 }
  0xb7   :  { %v128_v22 = vmul.f32 %v126_v14, %v122_v2  ;;  %v131_v23 = vmul.f32 %v129_v15, %v121_v57  ;;  %v142_v25 = vmul.f32 %v140_v17, %v122_v2  ;;  %v243_v6 = vadd.f32 -1.0, %v401_v24 }
  0xb8   :  { %v145_v28 = vmul.f32 %v143_v20, %v121_v57 }
  0xb9   :  { %v130_v31 = vadd.f32 -0.0027777778, %v128_v22  ;;  %v133_v33 = vadd.f32 0.083333336, %v131_v23  ;;  %v144_v35 = vsub.f32 0.008333334, %v142_v25 }
  0xba   :  { %v147_v40 = vsub.f32 0.083333336, %v145_v28 }
  0xbb   :  { %v132_v43 = vmul.f32 %v130_v31, %v122_v2  ;;  %v135_v32 = vmul.f32 %v133_v33, %v113_v54  ;;  %v146_v44 = vmul.f32 %v144_v35, %v122_v2  ;;  %v119_v54 = vsel %vm67_vm0, %v117_v48, 0.0 }
  0xbc   :  { %v149_v49 = vmul.f32 %v147_v40, %v121_v57  ;;  %v105_v57 = vsel %vm67_vm0, %v102_v47, 0.0 }
  0xbd   :  { %v134_v51 = vadd.f32 0.083333336, %v132_v43  ;;  %v148_v39 = vsub.f32 0.083333336, %v146_v44  ;;  %v159_v60 = vadd.f32 %v157_v52, %v135_v32 }
  0xbe   :  { %v167_v59 = vsub.f32 %v165_v50, %v149_v49 }
  0xbf   :  { %v136_v41 = vmul.f32 %v134_v51, %v114_v61  ;;  %v150_v46 = vmul.f32 %v148_v39, %v122_v2  ;;  %v242_v61 = vadd.f32 -1.0, %v398_v21  ;;  %v161_v5 = vsub.f32 %v159_v60, %v105_v57 }
  0xc0   :  { %v169_v0 = vsub.f32 %v167_v59, %v119_v54 }
  0xc1   :  { %v160_v62 = vadd.f32 %v158_v55, %v136_v41  ;;  %v168_v63 = vsub.f32 %v166_v58, %v150_v46 }
  0xc2   :  { %v189_v8 = vmul.f32 %v242_v61, %v169_v0 }
  0xc3   :  { %v162_v2 = vsub.f32 %v160_v62, %v106_v1  ;;  %v170_v4 = vsub.f32 %v168_v63, %v120_v3 }
  0xc5   :  { %v179_v7 = vadd.f32 %v162_v2, %v161_v5  ;;  %v190_v9 = vmul.f32 %v243_v6, %v170_v4 }
  0xc7   :  { %v180_v10 = vrot.slane %v179_v7, 4  ;;  %v191_v11 = vadd.f32 %v190_v9, %v189_v8 }
  0xc9   :  { %v181_v12 = vadd.f32 %v180_v10, %v179_v7  ;;  %v192_v13 = vrot.slane %v191_v11, 4 }
  0xcb   :  { %v182_v14 = vrot.slane %v181_v12, 2  ;;  %v193_v15 = vadd.f32 %v192_v13, %v191_v11 }
  0xcd   :  { %v183_v16 = vadd.f32 %v182_v14, %v181_v12  ;;  %v194_v17 = vrot.slane %v193_v15, 2 }
  0xcf   :  { %v184_v18 = vrot.slane %v183_v16, 1  ;;  %v195_v21 = vadd.f32 %v194_v17, %v193_v15 }
  0xd1   :  { %v185_v19 = vadd.f32 %v184_v18, %v183_v16  ;;  %v196_v24 = vrot.slane %v195_v21, 1 }
  0xd3   :  { %186 = vst [vmem:[#allocation4] sm:$0x1] %v185_v19  ;;  %v197_v20 = vadd.f32 %v196_v24, %v195_v21 }
  0xd4   :  { %294 = shalt.err (!%p291_p9)
}
  0xd5   :  { %218 = dma.vmem_to_hbm [thread:$0]  %s216_s22, 16, %s463_s2, [#allocation5]   ;;  %198 = vst [vmem:[#allocation6] sm:$0x1] %v197_v20 }
  0xd6   :  { %s303_s29 = scalar_lea.vmem %s226_s24, 16  ;;  %s307_s30 = scalar_lea.vmem %s226_s24, 32 }
  0xd7   :  { %p304_p10 = scmp.ne.s32.totalorder %s226_s24, %s303_s29  ;;  %p308_p11 = scmp.lt.s32.totalorder %s226_s24, %s226_s24 }
  0xd8   :  { %p309_p12 = scmp.lt.s32.totalorder %s307_s30, %s303_s29 }
  0xda   :  { %p310_p13 = por %p309_p12, %p308_p11 }
  0xdc   :  { %p311_p0 = pnand %p310_p13, %p304_p10 }
  0xde   :  { %314 = shalt.err (!%p311_p0)
}
  0xdf   :  { %228 = dma.vmem_to_hbm [thread:$0]  %s226_s24, 16, %s464_s3, [#allocation5]  }
  0xe0   :  { %323 = dma.done.wait [#allocation3], 16  }
  0xe1   :  { %324 = vsyncadd [#allocation3], 4294967280 }
  0xe2   :  { %325 = dma.done.wait [#allocation5], 32  }
  0xe3   :  { %326 = vsyncadd [#allocation5], 4294967264 }
  0xe4   :  { %238 = vsyncpa [#allocation3], 1 }
  0xe5   :  { %239 = vsyncpa [#allocation5], 1 }

// kernel: tpu_custom_call.1
= control target key start
LH: loop header
LB: loop body
LE: loop exit
PB: predicated region body
PF: predicated region fallthrough
CT: control target
= control target key end

     0   :  { %9 = vsyncpa [#allocation3], 0  ;;  %s373_s0 = inlined_call_operand.vmem [shape: f32[16,8], index: 0, kind: input, shape index: {}]   ;;  %s374_s1 = inlined_call_operand.hbm [shape: f32[1,8], index: 1, kind: output, shape index: {0}]   ;;  %s375_s2 = inlined_call_operand.hbm [shape: f32[1,8], index: 2, kind: output, shape index: {1}]   ;;  %s376_s3 = inlined_call_operand.hbm [shape: f32[1,8], index: 3, kind: output, shape index: {2}]  }
   0x1   :  { %v13_v0 = vld [vmem:[%s373_s0] sm:$0xff]  ;;  %v14_v1 = vld [vmem:[%s373_s0 + $0x8] sm:$0xff] }
   0x2   :  { %10 = vsyncpa [#allocation5], 0  ;;  %v15_v2 = vmul.f32 1.442695, %v13_v0  ;;  %v17_v3 = vmul.f32 1.442695, %v14_v1 }
   0x3   :  { %s281_s0 = smov [#allocation2]  }
   0x4   :  { %201 = vpow2.f32 %v15_v2  ;;  %s159_s16 = sshll.u32 %s281_s0, 4  ;;  %s160_s16 = int_to_ptr.vmem [resolvable:$true] %s159_s16 }
   0x5   :  { %203 = vpow2.f32 %v17_v3  ;;  %s217_s17 = scalar_lea.vmem %s160_s16, 16  ;;  %s221_s18 = scalar_lea.vmem %s160_s16, 32 }
   0x6   :  { %p218_p0 = scmp.ne.s32.totalorder %s160_s16, %s217_s17  ;;  %p222_p1 = scmp.lt.s32.totalorder %s160_s16, %s160_s16 }
   0x7   :  { %p223_p2 = scmp.lt.s32.totalorder %s221_s18, %s217_s17 }
   0x9   :  { %p224_p3 = por %p223_p2, %p222_p1 }
   0xb   :  { %p225_p4 = pnand %p224_p3, %p218_p0 }
  0x11   :  { %v202_v4 = vpop.eup %201 }
  0x12   :  { %v204_v5 = vpop.eup %203  ;;  %v310_v6 = vadd.f32 1e-08, %v202_v4 }
  0x13   :  { %v312_v7 = vadd.f32 1e-08, %v204_v5 }
  0x14   :  { %v23_v8 = vmin.f32 %v310_v6, 4.0  ;;  %v47_v15 = vadd.f32 4.0, %v310_v6  ;;  %vm21_vm0 = vcmp.lt.f32.partialorder %v310_v6, 4.0 }
  0x15   :  { %v24_v9 = vmin.f32 %v312_v7, 4.0  ;;  %v125_v10 = vadd.f32 %v312_v7, %v310_v6  ;;  %v48_v18 = vadd.f32 4.0, %v312_v7  ;;  %vm22_vm1 = vcmp.lt.f32.partialorder %v312_v7, 4.0 }
  0x16   :  { %v25_v11 = vadd.f32 1.0, %v23_v8  ;;  %v31_v12 = vadd.f32 2.0, %v23_v8  ;;  %v39_v17 = vadd.f32 3.0, %v23_v8  ;;  %v329_v24 = vsel %vm21_vm0, %v47_v15, %v310_v6 }
  0x17   :  { %v26_v13 = vadd.f32 1.0, %v24_v9  ;;  %v32_v14 = vadd.f32 2.0, %v24_v9  ;;  %v40_v20 = vadd.f32 3.0, %v24_v9  ;;  %v126_v21 = vrot.slane %v125_v10, 4 }
  0x18   :  { %v29_v16 = vmul.f32 %v25_v11, %v23_v8  ;;  %v335_v27 = vsel %vm22_vm1, %v48_v18, %v312_v7  ;;  %205 = vlog2.f32 %v329_v24  ;;  %v27_v35 = vadd.f32 %v25_v11, %v23_v8 }
  0x19   :  { %v30_v19 = vmul.f32 %v26_v13, %v24_v9  ;;  %v127_v25 = vadd.f32 %v126_v21, %v125_v10  ;;  %207 = vlog2.f32 %v335_v27 }
  0x1a   :  { %v322_v22 = vmul.f32 %v31_v12, %v29_v16 }
  0x1b   :  { %v324_v23 = vmul.f32 %v32_v14, %v30_v19  ;;  %v128_v29 = vrot.slane %v127_v25, 2 }
  0x1c   :  { %v45_v26 = vmul.f32 %v39_v17, %v322_v22 }
  0x1d   :  { %v46_v28 = vmul.f32 %v40_v20, %v324_v23  ;;  %v129_v32 = vadd.f32 %v128_v29, %v127_v25 }
  0x1e   :  { %v61_v30 = vmul.f32 %v329_v24, %v45_v26 }
  0x1f   :  { %v62_v31 = vmul.f32 %v335_v27, %v46_v28  ;;  %v130_v33 = vrot.slane %v129_v32, 1 }
  0x20   :  { %209 = vrcp.f32 %v61_v30 }
  0x21   :  { %211 = vrcp.f32 %v62_v31  ;;  %v131_v34 = vadd.f32 %v130_v33, %v129_v32 }
  0x23   :  { %132 = vst [vmem:[#allocation2] sm:$0x1] %v131_v34 }
  0x24   :  { %228 = shalt.err (!%p225_p4)
}
  0x25   :  { %162 = dma.vmem_to_hbm [thread:$0]  %s160_s16, 16, %s374_s1, [#allocation3]   ;;  %v28_v36 = vadd.f32 %v26_v13, %v24_v9  ;;  %213 = vlog2.f32 %v45_v26  ;;  %v33_v37 = vmul.f32 %v31_v12, %v27_v35  ;;  %v206_v38 = vpop.eup %205  ;;  %v194_v45 = vadd.f32 -0.5, %v329_v24 }
  0x26   :  { %215 = vlog2.f32 %v46_v28  ;;  %v208_v40 = vpop.eup %207  ;;  %v345_v43 = vmul.f32 0.6931472, %v206_v38  ;;  %v195_v52 = vadd.f32 -0.5, %v335_v27  ;;  %s282_s1 = smov [#allocation4]   ;;  %s283_s22 = smov [#allocation6]  }
  0x27   :  { %v34_v39 = vmul.f32 %v32_v14, %v28_v36  ;;  %v35_v46 = vadd.f32 %v33_v37, %v29_v16  ;;  %v54_v50 = vmul.f32 0.6931472, %v208_v40  ;;  %s169_s21 = sshll.u32 %s282_s1, 4  ;;  %s179_s23 = sshll.u32 %s283_s22, 4  ;;  %s170_s21 = int_to_ptr.vmem [resolvable:$true] %s169_s21  ;;  %s180_s23 = int_to_ptr.vmem [resolvable:$true] %s179_s23 }
  0x28   :  { %v107_v54 = vmul.f32 %v194_v45, %v345_v43  ;;  %s237_s24 = scalar_lea.vmem %s170_s21, 16  ;;  %s241_s25 = scalar_lea.vmem %s170_s21, 32 }
  0x29   :  { %v36_v48 = vadd.f32 %v34_v39, %v30_v19  ;;  %v41_v55 = vmul.f32 %v39_v17, %v35_v46  ;;  %v108_v63 = vmul.f32 %v195_v52, %v54_v50  ;;  %v196_v39 = vadd.f32 -1.0, %v310_v6  ;;  %p238_p5 = scmp.ne.s32.totalorder %s170_s21, %s237_s24  ;;  %p242_p6 = scmp.lt.s32.totalorder %s170_s21, %s170_s21 }
  0x2a   :  { %v109_v2 = vsub.f32 %v107_v54, %v329_v24  ;;  %v197_v52 = vadd.f32 -1.0, %v312_v7  ;;  %p243_p7 = scmp.lt.s32.totalorder %s241_s25, %s237_s24 }
  0x2b   :  { %v42_v58 = vmul.f32 %v40_v20, %v36_v48  ;;  %v43_v3 = vadd.f32 %v41_v55, %v322_v22  ;;  %v110_v18 = vsub.f32 %v108_v63, %v335_v27 }
  0x2c   :  { %v111_v25 = vadd.f32 0.9189385, %v109_v2  ;;  %p244_p8 = por %p243_p7, %p242_p6 }
  0x2d   :  { %v210_v41 = vpop.eup %209  ;;  %v44_v9 = vadd.f32 %v42_v58, %v324_v23  ;;  %v112_v35 = vadd.f32 0.9189385, %v110_v18 }
  0x2e   :  { %v212_v42 = vpop.eup %211  ;;  %v67_v44 = vmul.f32 %v210_v41, %v45_v26  ;;  %v69_v10 = vmul.f32 %v210_v41, %v329_v24  ;;  %p245_p9 = pnand %p244_p8, %p238_p5 }
  0x2f   :  { %v68_v47 = vmul.f32 %v212_v42, %v46_v28  ;;  %v70_v14 = vmul.f32 %v212_v42, %v335_v27 }
  0x30   :  { %v75_v49 = vmul.f32 %v67_v44, %v67_v44  ;;  %v117_v16 = vmul.f32 0.5, %v67_v44  ;;  %v71_v29 = vmul.f32 %v69_v10, %v43_v3 }
  0x31   :  { %v76_v51 = vmul.f32 %v68_v47, %v68_v47  ;;  %v118_v20 = vmul.f32 0.5, %v68_v47  ;;  %v72_v31 = vmul.f32 %v70_v14, %v44_v9 }
  0x32   :  { %v77_v53 = vmul.f32 -0.0005952381, %v75_v49  ;;  %v91_v56 = vmul.f32 0.004166667, %v75_v49  ;;  %v214_v5 = vpop.eup %213  ;;  %v119_v33 = vsub.f32 %v345_v43, %v117_v16  ;;  %v73_v42 = vsel %vm21_vm0, %v71_v29, 0.0 }
  0x33   :  { %v78_v57 = vmul.f32 -0.0005952381, %v76_v51  ;;  %v92_v59 = vmul.f32 0.004166667, %v76_v51  ;;  %v216_v12 = vpop.eup %215  ;;  %v56_v21 = vmul.f32 0.6931472, %v214_v5  ;;  %v120_v37 = vsub.f32 %v54_v50, %v118_v20 }
  0x34   :  { %v79_v60 = vadd.f32 0.0007936508, %v77_v53  ;;  %v93_v61 = vsub.f32 0.003968254, %v91_v56  ;;  %v58_v28 = vmul.f32 0.6931472, %v216_v12 }
  0x35   :  { %v80_v62 = vadd.f32 0.0007936508, %v78_v57  ;;  %v94_v0 = vsub.f32 0.003968254, %v92_v59  ;;  %v59_v40 = vsel %vm21_vm0, %v56_v21, 0.0  ;;  %v74_v48 = vsel %vm22_vm1, %v72_v31, 0.0 }
  0x36   :  { %v81_v1 = vmul.f32 %v79_v60, %v75_v49  ;;  %v95_v4 = vmul.f32 %v93_v61, %v75_v49  ;;  %v60_v46 = vsel %vm22_vm1, %v58_v28, 0.0 }
  0x37   :  { %v82_v8 = vmul.f32 %v80_v62, %v76_v51  ;;  %v96_v11 = vmul.f32 %v94_v0, %v76_v51 }
  0x38   :  { %v83_v13 = vadd.f32 -0.0027777778, %v81_v1  ;;  %v97_v15 = vsub.f32 0.008333334, %v95_v4 }
  0x39   :  { %v84_v17 = vadd.f32 -0.0027777778, %v82_v8  ;;  %v98_v19 = vsub.f32 0.008333334, %v96_v11 }
  0x3a   :  { %v85_v22 = vmul.f32 %v83_v13, %v75_v49  ;;  %v99_v26 = vmul.f32 %v97_v15, %v75_v49 }
  0x3b   :  { %v86_v23 = vmul.f32 %v84_v17, %v76_v51  ;;  %v100_v24 = vmul.f32 %v98_v19, %v76_v51 }
  0x3c   :  { %v87_v30 = vadd.f32 0.083333336, %v85_v22  ;;  %v101_v32 = vsub.f32 0.083333336, %v99_v26 }
  0x3d   :  { %v88_v34 = vadd.f32 0.083333336, %v86_v23  ;;  %v102_v36 = vsub.f32 0.083333336, %v100_v24 }
  0x3e   :  { %v89_v27 = vmul.f32 %v87_v30, %v67_v44  ;;  %v103_v38 = vmul.f32 %v101_v32, %v75_v49 }
  0x3f   :  { %v90_v41 = vmul.f32 %v88_v34, %v68_v47  ;;  %v104_v45 = vmul.f32 %v102_v36, %v76_v51 }
  0x40   :  { %v113_v43 = vadd.f32 %v111_v25, %v89_v27  ;;  %v121_v50 = vsub.f32 %v119_v33, %v103_v38 }
  0x41   :  { %v114_v44 = vadd.f32 %v112_v35, %v90_v41  ;;  %v122_v49 = vsub.f32 %v120_v37, %v104_v45 }
  0x42   :  { %v115_v53 = vsub.f32 %v113_v43, %v59_v40  ;;  %v123_v54 = vsub.f32 %v121_v50, %v73_v42 }
  0x43   :  { %v116_v55 = vsub.f32 %v114_v44, %v60_v46  ;;  %v124_v47 = vsub.f32 %v122_v49, %v74_v48 }
  0x44   :  { %v143_v56 = vmul.f32 %v196_v39, %v123_v54 }
  0x45   :  { %v133_v6 = vadd.f32 %v116_v55, %v115_v53  ;;  %v144_v57 = vmul.f32 %v197_v52, %v124_v47 }
  0x47   :  { %v134_v51 = vrot.slane %v133_v6, 4  ;;  %v145_v58 = vadd.f32 %v144_v57, %v143_v56 }
  0x49   :  { %v135_v59 = vadd.f32 %v134_v51, %v133_v6  ;;  %v146_v60 = vrot.slane %v145_v58, 4 }
  0x4b   :  { %v136_v61 = vrot.slane %v135_v59, 2  ;;  %v147_v62 = vadd.f32 %v146_v60, %v145_v58 }
  0x4d   :  { %v137_v63 = vadd.f32 %v136_v61, %v135_v59  ;;  %v148_v0 = vrot.slane %v147_v62, 2 }
  0x4f   :  { %v138_v1 = vrot.slane %v137_v63, 1  ;;  %v149_v2 = vadd.f32 %v148_v0, %v147_v62 }
  0x51   :  { %v139_v7 = vadd.f32 %v138_v1, %v137_v63  ;;  %v150_v3 = vrot.slane %v149_v2, 1 }
  0x53   :  { %140 = vst [vmem:[#allocation4] sm:$0x1] %v139_v7  ;;  %v151_v4 = vadd.f32 %v150_v3, %v149_v2 }
  0x54   :  { %248 = shalt.err (!%p245_p9)
}
  0x55   :  { %172 = dma.vmem_to_hbm [thread:$0]  %s170_s21, 16, %s375_s2, [#allocation5]   ;;  %152 = vst [vmem:[#allocation6] sm:$0x1] %v151_v4 }
  0x56   :  { %s257_s28 = scalar_lea.vmem %s180_s23, 16  ;;  %s261_s29 = scalar_lea.vmem %s180_s23, 32 }
  0x57   :  { %p258_p10 = scmp.ne.s32.totalorder %s180_s23, %s257_s28  ;;  %p262_p11 = scmp.lt.s32.totalorder %s180_s23, %s180_s23 }
  0x58   :  { %p263_p12 = scmp.lt.s32.totalorder %s261_s29, %s257_s28 }
  0x5a   :  { %p264_p13 = por %p263_p12, %p262_p11 }
  0x5c   :  { %p265_p0 = pnand %p264_p13, %p258_p10 }
  0x5e   :  { %268 = shalt.err (!%p265_p0)
}
  0x5f   :  { %182 = dma.vmem_to_hbm [thread:$0]  %s180_s23, 16, %s376_s3, [#allocation5]  }
  0x60   :  { %277 = dma.done.wait [#allocation3], 16  }
  0x61   :  { %278 = vsyncadd [#allocation3], 4294967280 }
  0x62   :  { %279 = dma.done.wait [#allocation5], 32  }
  0x63   :  { %280 = vsyncadd [#allocation5], 4294967264 }
  0x64   :  { %192 = vsyncpa [#allocation3], 1 }
  0x65   :  { %193 = vsyncpa [#allocation5], 1 }

</bundles_post_ra>
